<compile_context>
chip_gen: v6e
topology: v6e:2x2x1
jax: 0.10.0
libtpu: 0.0.40
codegen_flags: <defaults>
</compile_context>

<pallas_src>
import numpy as np
import jax
import jax.numpy as jnp
from jax.experimental import pallas as pl
from jax.experimental.pallas import tpu as pltpu


_LANE = 128
_MIN_STEP_HBM_BYTES = 2 * 1024 * 1024     # aim for >= ~2 MiB HBM traffic per grid step
_SMALL_FALLBACK_BYTES = 256 * 1024        # below this, the plain XLA add wins


def make_pos_table(d_model: int, max_len: int) -> jnp.ndarray:
    """Exact reproduction of the PyTorch __init__ table construction."""
    pos_table = np.array(
        [
            [pos / np.power(10000, 2 * i / d_model) for i in range(d_model)]
            if pos != 0
            else np.zeros(d_model)
            for pos in range(max_len)
        ]
    )
    pos_table[1:, 0::2] = np.sin(pos_table[1:, 0::2])
    pos_table[1:, 1::2] = np.cos(pos_table[1:, 1::2])
    return jnp.asarray(pos_table, dtype=jnp.float32)


def _pe_kernel(x_ref, pos_ref, o_ref):
    # x_ref: (B, tF) or (B, G, tC); pos_ref: (1, tF) or (1, G, tC).
    # Single VPU add, broadcasting the positional tile over the batch dim.
    o_ref[...] = x_ref[...] + pos_ref[...]


def _sublane_unit(itemsize: int) -> int:
    # f32 packs 8 rows per sublane group, bf16 16, int8 32.
    return max(8, 32 // max(1, itemsize))


def _pad_up(x: int, m: int) -> int:
    return ((x + m - 1) // m) * m


def _vmem_plan():
    """Return (working-set budget, vmem_limit_bytes) for the current TPU gen."""
    cap = 64 * 1024 * 1024                 # conservative default = v7x physical VMEM
    try:
        cap = int(pltpu.get_tpu_info().vmem_capacity_bytes)
    except Exception:
        pass
    budget = cap // 4                      # padded + double-buffered working-set target
    limit = min(cap * 3 // 4, budget * 2 + (4 << 20))
    return budget, limit


def _plan_fold(B: int, F: int, itemsize: int):
    """Fold (B, F) -> (B, G, C) so sublanes are full when B is small.

    Requires F % 128 == 0, G | (F // 128); prefers the smallest multiple-of-
    sublane divisor so C (the lane axis) stays as large as possible.
    """
    sub = _sublane_unit(itemsize)
    if B >= sub or F % _LANE != 0:
        return None
    q = F // _LANE
    for g in range(sub, min(q, 512) + 1, sub):
        if q % g == 0:
            return g, F // g
    for g in range(sub, min(q, 512) + 1):      # any divisor >= sub still beats B rows
        if q % g == 0:
            return g, F // g
    return None


def _choose_lane_tile(total: int, padded_bytes_per_lane: int, budget: int,
                      total_hbm_bytes: int) -> int:
    """Lane-axis tile: multiple of 128 (or full extent), VMEM-bounded (with
    sublane padding + double buffering accounted), >= 2 steps for large arrays
    (v7x megacore), preferring tiles that divide `total`."""
    if total <= _LANE:
        return total
    t = max(_LANE, (budget // padded_bytes_per_lane) // _LANE * _LANE)
    t = min(t, _pad_up(total, _LANE))
    if total_hbm_bytes >= 2 * _MIN_STEP_HBM_BYTES:     # "large": guarantee >= 2 steps
        t = min(t, max(_LANE, (total // 2) // _LANE * _LANE))
    if total % _LANE == 0:                             # prefer a divisor (no ragged block)
        cand = t
        for _ in range(64):
            if cand < _LANE:
                break
            if total % cand == 0:
                return cand
            cand -= _LANE
    return t


def positional_encoding(enc_inputs: jnp.ndarray, pos_table: jnp.ndarray, *,
                        force_pallas: bool = False,
                        donate_inputs: bool = False) -> jnp.ndarray:
    """enc_inputs: [B, S, D]; pos_table: [max_len, D] with max_len >= S."""
    B, S, D = enc_inputs.shape
    dtype = enc_inputs.dtype
    itemsize = jnp.dtype(dtype).itemsize

    # Glue -- ideally hoisted to model-build time: pass a pre-sliced, pre-cast
    # (S, D) table and this branch becomes a no-op.
    if pos_table.shape[0] != S or pos_table.dtype != dtype:
        pos = pos_table[:S, :].astype(dtype)
    else:
        pos = pos_table

    x_bytes = B * S * D * itemsize
    if x_bytes < _SMALL_FALLBACK_BYTES and not force_pallas:
        # Tiny input: launch + pipeline prologue dominates; let XLA fuse the add.
        return enc_inputs + pos[None]       # TODO(synk): training-mode dropout

    F = S * D
    total_hbm = (2 * B + 1) * F * itemsize   # x read + pos read + out write
    budget, vmem_limit = _vmem_plan()
    sub = _sublane_unit(itemsize)

    fold = _plan_fold(B, F, itemsize)
    if fold is not None:
        # Sublane-folded layout: full sublanes even for tiny batch.
        G, C = fold
        x_in = enc_inputs.reshape(B, G, C)
        pos_in = pos.reshape(1, G, C)
        rows = (2 * B + 1) * _pad_up(G, sub)            # x in + pos in + out, padded
        tile = _choose_lane_tile(C, 2 * rows * itemsize, budget, total_hbm)
        grid = (pl.cdiv(C, tile),)
        x_spec = pl.BlockSpec((B, G, tile), lambda c: (0, 0, c))
        pos_spec = pl.BlockSpec((1, G, tile), lambda c: (0, 0, c))
        out_shape = jax.ShapeDtypeStruct((B, G, C), dtype)
    else:
        # Plain lane-dense 2-D layout (B already fills sublanes, or F % 128 != 0).
        x_in = enc_inputs.reshape(B, F)
        pos_in = pos.reshape(1, F)
        rows = 2 * _pad_up(B, sub) + sub                # x + out padded, pos pads to 1 group
        tile = _choose_lane_tile(F, 2 * rows * itemsize, budget, total_hbm)
        grid = (pl.cdiv(F, tile),)
        x_spec = pl.BlockSpec((B, tile), lambda f: (0, f))
        pos_spec = pl.BlockSpec((1, tile), lambda f: (0, f))
        out_shape = jax.ShapeDtypeStruct((B, F), dtype)

    out = pl.pallas_call(
        _pe_kernel,
        out_shape=out_shape,
        grid=grid,
        in_specs=[x_spec, pos_spec],
        out_specs=x_spec,
        compiler_params=pltpu.CompilerParams(
            dimension_semantics=("parallel",),
            vmem_limit_bytes=vmem_limit,
        ),
        cost_estimate=pl.CostEstimate(
            flops=B * F, transcendentals=0, bytes_accessed=total_hbm),
        # Reproduces the module's in-place `enc_inputs +=` when the caller donates.
        input_output_aliases={0: 0} if donate_inputs else {},
    )(x_in, pos_in)

    return out.reshape(B, S, D)


if __name__ == "__main__":
    key = jax.random.PRNGKey(0)
    k0, k1 = jax.random.split(key)

    # Small shape implied by the module (batch=2, seq=8, d_model=32).
    d_model, max_len, batch, seq = 32, 64, 2, 8
    x_small = jax.random.normal(k0, (batch, seq, d_model), dtype=jnp.float32)
    table = make_pos_table(d_model, max_len)
    ref_small = np.asarray(x_small) + np.asarray(table[:seq, :])

    # Default path: tiny input -> plain XLA fallback (no launch-overhead regression).
    out_fb = jax.block_until_ready(positional_encoding(x_small, table))
    np.testing.assert_allclose(np.asarray(out_fb), ref_small, rtol=1e-6, atol=1e-6)

    # Forced Pallas path on the same small shape (exercises the 2-D kernel).
    out_small = jax.block_until_ready(
        positional_encoding(x_small, table, force_pallas=True))
    np.testing.assert_allclose(np.asarray(out_small), ref_small, rtol=1e-6, atol=1e-6)

    # Moderate shape: exercises the sublane-folded 3-D layout, the hoisted
    # (pre-sliced) pos-table fast path, and a multi-step "parallel" grid.
    d_model2, seq2 = 256, 1024
    x_med = jax.random.normal(k1, (batch, seq2, d_model2), dtype=jnp.float32)
    table2 = make_pos_table(d_model2, seq2)           # already (S, D), float32
    ref_med = np.asarray(x_med) + np.asarray(table2)
    out_med = jax.block_until_ready(positional_encoding(x_med, table2))
    np.testing.assert_allclose(np.asarray(out_med), ref_med, rtol=1e-6, atol=1e-6)

    print("KERNEL_OK")
</pallas_src>

<mosaic_0001>
module attributes {stable_mosaic.version = 11 : i64} {
  func.func @_pe_kernel(%arg0: i32, %arg1: memref<2x256xf32, #tpu.memory_space<vmem>>, %arg2: memref<1x256xf32, #tpu.memory_space<vmem>>, %arg3: memref<2x256xf32, #tpu.memory_space<vmem>>) attributes {dimension_semantics = [#tpu.dimension_semantics<parallel>], iteration_bounds = array<i64: 1>, scalar_prefetch = 0 : i64, scratch_operands = 0 : i64, tpu.core_type = #tpu.core_type<tc>, window_params = [{transform_indices = @transform_0, window_bounds = array<i64: 2, 256>}, {transform_indices = @transform_1, window_bounds = array<i64: 1, 256>}, {transform_indices = @transform_2, window_bounds = array<i64: 2, 256>}]} {
    %c0 = arith.constant 0 : index
    %c0_0 = arith.constant 0 : index
    %0 = vector.load %arg1[%c0, %c0_0] : memref<2x256xf32, #tpu.memory_space<vmem>>, vector<2x256xf32>
    %c0_1 = arith.constant 0 : index
    %c0_2 = arith.constant 0 : index
    %1 = vector.load %arg2[%c0_1, %c0_2] : memref<1x256xf32, #tpu.memory_space<vmem>>, vector<1x256xf32>
    %2 = vector.broadcast %1 : vector<1x256xf32> to vector<2x256xf32>
    %3 = arith.addf %0, %2 : vector<2x256xf32>
    %c0_3 = arith.constant 0 : index
    %c0_4 = arith.constant 0 : index
    %4 = vector.load %arg3[%c0_3, %c0_4] : memref<2x256xf32, #tpu.memory_space<vmem>>, vector<2x256xf32>
    tpu.vector_store %arg3[%c0_3, %c0_4], %3 {strides = array<i32>} : memref<2x256xf32, #tpu.memory_space<vmem>>, vector<2x256xf32>,
    return
  }
  func.func @transform_0(%arg0: i32) -> (i32, i32) {
    %c0_i32 = arith.constant 0 : i32
    %c0_i32_0 = arith.constant 0 : i32
    return %c0_i32, %arg0 : i32, i32
  }
  func.func @transform_1(%arg0: i32) -> (i32, i32) {
    %c0_i32 = arith.constant 0 : i32
    %c0_i32_0 = arith.constant 0 : i32
    return %c0_i32, %arg0 : i32, i32
  }
  func.func @transform_2(%arg0: i32) -> (i32, i32) {
    %c0_i32 = arith.constant 0 : i32
    %c0_i32_0 = arith.constant 0 : i32
    return %c0_i32, %arg0 : i32, i32
  }
}

</mosaic_0001>

<bundles_post_ra>
// kernel: tpu_custom_call.1
= control target key start
LH: loop header
LB: loop body
LE: loop exit
PB: predicated region body
PF: predicated region fallthrough
CT: control target
= control target key end

     0   :  { %7 = vsyncpa [#allocation3], 0  ;;  %s172_s0 = inlined_call_operand.hbm [shape: f32[2,256], index: 0, kind: input, shape index: {}]   ;;  %s173_s1 = inlined_call_operand.hbm [shape: f32[1,256], index: 1, kind: input, shape index: {}]   ;;  %s174_s2 = inlined_call_operand.hbm [shape: f32[2,256], index: 2, kind: output, shape index: {}]  }
   0x1   :  { %8 = vsyncpa [#allocation6], 0 }
   0x2   :  { %9 = vsyncpa [#allocation4], 0  ;;  %s144_s9 = smov [#allocation2]   ;;  %s145_s11 = smov [#allocation5]  }
   0x3   :  { %s16_s10 = sshll.u32 %s144_s9, 4  ;;  %s26_s12 = sshll.u32 %s145_s11, 4  ;;  %s17_s10 = int_to_ptr.vmem [resolvable:$true] %s16_s10  ;;  %s27_s12 = int_to_ptr.vmem [resolvable:$true] %s26_s12 }
   0x4   :  { %s86_s13 = scalar_lea.vmem %s17_s10, 64  ;;  %p91_p1 = scmp.lt.s32.totalorder %s17_s10, %s17_s10 }
   0x5   :  { %p87_p0 = scmp.ne.s32.totalorder %s17_s10, %s86_s13  ;;  %p92_p2 = scmp.lt.s32.totalorder %s86_s13, %s86_s13 }
   0x7   :  { %p93_p3 = por %p92_p2, %p91_p1 }
   0x9   :  { %p94_p4 = pnand %p93_p3, %p87_p0 }
   0xb   :  { %97 = shalt.err (!%p94_p4)
}
   0xc   :  { %19 = dma.hbm_to_vmem [thread:$0]  %s172_s0, 64, %s17_s10, [#allocation3]  }
   0xd   :  { %s106_s16 = scalar_lea.vmem %s27_s12, 32  ;;  %p111_p6 = scmp.lt.s32.totalorder %s27_s12, %s27_s12 }
   0xe   :  { %p107_p5 = scmp.ne.s32.totalorder %s27_s12, %s106_s16  ;;  %p112_p7 = scmp.lt.s32.totalorder %s106_s16, %s106_s16 }
  0x10   :  { %p113_p8 = por %p112_p7, %p111_p6 }
  0x12   :  { %p114_p9 = pnand %p113_p8, %p107_p5 }
  0x14   :  { %117 = shalt.err (!%p114_p9)
}
  0x15   :  { %29 = dma.hbm_to_vmem [thread:$0]  %s173_s1, 32, %s27_s12, [#allocation6]  }
  0x16   :  { %138 = dma.done.wait [#allocation3], 64  }
  0x17   :  { %139 = vsyncadd [#allocation3], 4294967232 }
  0x18   :  { %140 = dma.done.wait [#allocation6], 32  }
  0x19   :  { %141 = vsyncadd [#allocation6], 4294967264  ;;  %v39_v0 = vlaneseq  ;;  %v146_v1 = vmov 1983009808   ;;  %v37_v7 = vld [vmem:[#allocation5] sm:$0x3] }
  0x1a   :  { %v49_v2 = vunpack.c.l.s4 %v146_v1  ;;  %v36_v12 = vld [vmem:[#allocation2] sm:$0xf]  ;;  %s147_s0 = smov [#allocation7]  }
  0x1b   :  { %v40_v3 = vshrl.u32 %v39_v0, 7  ;;  %s64_s19 = sshll.u32 %s147_s0, 4  ;;  %s65_s19 = int_to_ptr.vmem [resolvable:$true] %s64_s19 }
  0x1c   :  { %v50_v6 = vunpack.c.0.s8 %v49_v2  ;;  %s118_s1 = scalar_lea.vmem %s65_s19, 64  ;;  %p123_p11 = scmp.lt.s32.totalorder %s65_s19, %s65_s19 }
  0x1d   :  { %v41_v4 = vsub.s32 0, %v40_v3  ;;  %v45_v5 = vsub.s32 1, %v40_v3  ;;  %p119_p10 = scmp.ne.s32.totalorder %s65_s19, %s118_s1  ;;  %p124_p12 = scmp.lt.s32.totalorder %s118_s1, %s118_s1 }
  0x1e   :  { %v53_v10 = vsub.s32 %v50_v6, %v40_v3 }
  0x1f   :  { %v42_v8 = vrot.slane %v37_v7, %v41_v4  ;;  %v46_v9 = vrot.slane %v37_v7, %v45_v5  ;;  %p125_p13 = por %p124_p12, %p123_p11 }
  0x21   :  { %v47_v11 = vcombine.low %v42_v8, %v46_v9  ;;  %p126_p0 = pnand %p125_p13, %p119_p10 }
  0x23   :  { %v54_v13 = vrot.slane %v47_v11, %v53_v10 }
  0x25   :  { %v56_v14 = vadd.f32 %v54_v13, %v36_v12 }
  0x27   :  { %57 = vst [vmem:[#allocation7] sm:$0xf] %v56_v14 }
  0x28   :  { %129 = shalt.err (!%p126_p0)
}
  0x29   :  { %67 = dma.vmem_to_hbm [thread:$0]  %s65_s19, 64, %s174_s2, [#allocation4]  }
  0x2a   :  { %142 = dma.done.wait [#allocation4], 64  }
  0x2b   :  { %143 = vsyncadd [#allocation4], 4294967232 }
  0x2c   :  { %71 = vsyncpa [#allocation3], 1 }
  0x2d   :  { %72 = vsyncpa [#allocation6], 1 }
  0x2e   :  { %73 = vsyncpa [#allocation4], 1 }

</bundles_post_ra>
